<compile_context>
chip_gen: v5e
topology: v5e:2x2
jax: 0.10.0
libtpu: 0.0.40
codegen_flags: <defaults>
</compile_context>

<pallas_src>
import math
import functools

import jax
import jax.numpy as jnp
from jax import lax
from jax.experimental import pallas as pl
from jax.experimental.pallas import tpu as pltpu


# ----------------------------------------------------------------------------
# helpers
# ----------------------------------------------------------------------------
def _erf_poly(x):
    """Abramowitz & Stegun 7.1.26 erf approximation (max abs err ~1.5e-7).

    Uses only mul/add/div/exp/where so it lowers cleanly in Mosaic.
    """
    p = 0.3275911
    a1, a2, a3, a4, a5 = (0.254829592, -0.284496736, 1.421413741,
                          -1.453152027, 1.061405429)
    sgn = jnp.where(x >= 0, jnp.float32(1.0), jnp.float32(-1.0))
    ax = x * sgn
    t = 1.0 / (1.0 + p * ax)
    poly = ((((a5 * t + a4) * t + a3) * t + a2) * t + a1) * t
    return sgn * (1.0 - poly * jnp.exp(-ax * ax))


def _gelu_exact(x):
    # matches torch.nn.GELU() (erf form) up to ~1e-7
    return 0.5 * x * (1.0 + _erf_poly(x * (1.0 / math.sqrt(2.0))))


# ----------------------------------------------------------------------------
# Pallas kernel: one grid step == one batch element
# ----------------------------------------------------------------------------
def _st_embed_kernel(tok_ref, pos_ref, time_ref, table_ref, w1_ref, b1_ref,
                     w2_ref, b2_ref, mod_ref, o_ref, *, res):
    tok = tok_ref[0]          # (N, D)
    pos = pos_ref[0]          # (N, 2)  spatial positions in [0, 1)
    t = time_ref[0]           # (N, 1)  temporal positions
    n = tok.shape[0]

    # ---- spatial embedding: fused x/y gather as one (N,128)@(128,D) MXU dot
    x_idx = (pos[:, 0:1] * res).astype(jnp.int32)        # trunc == torch .long()
    y_idx = (pos[:, 1:2] * res).astype(jnp.int32)
    col = lax.broadcasted_iota(jnp.int32, (n, 2 * res), 1)
    onehot = jnp.where((col == x_idx) | (col == (y_idx + res)),
                       jnp.float32(1.0), jnp.float32(0.0))
    spatial = jnp.dot(onehot, table_ref[...],
                      preferred_element_type=jnp.float32)   # (N, D), right half 0

    # ---- temporal MLP: Linear(1,D/2) -> GELU -> Linear(D/2, D padded) -------
    h = t * w1_ref[...] + b1_ref[...]                       # (N, D/2) outer prod
    h = _gelu_exact(h)
    temporal = jnp.dot(h, w2_ref[...],
                       preferred_element_type=jnp.float32) + b2_ref[...]
    #                                                        (N, D), left half 0

    # ---- combine: tokens + spatial + temporal + modality, single full store -
    out = tok + spatial + temporal + mod_ref[...]
    o_ref[0] = out.astype(o_ref.dtype)


# ----------------------------------------------------------------------------
# One-time parameter preparation (hoisted out of the per-call wrapper)
# ----------------------------------------------------------------------------
def prepare_spatial_temporal_params(spatial_embed_x, spatial_embed_y,
                                    w1, b1, w2, b2, modality_embed):
    """PyTorch layouts in, kernel-friendly padded layouts out.

    spatial_embed_x/y: (1, res, D/4);  w1: (D/2, 1); b1: (D/2,)
    w2: (D/2, D/2); b2: (D/2,);  modality_embed: (1, 1, D)
    """
    res = spatial_embed_x.shape[1]
    dq = spatial_embed_x.shape[2]          # D/4
    dh = w1.shape[0]                       # D/2
    D = 4 * dq

    # block-diagonal, zero-padded gather table: rows [0,res) -> cols [0,D/4),
    # rows [res,2res) -> cols [D/4, D/2), everything else zero.
    table = jnp.zeros((2 * res, D), jnp.float32)
    table = table.at[:res, :dq].set(spatial_embed_x[0].astype(jnp.float32))
    table = table.at[res:, dq:2 * dq].set(spatial_embed_y[0].astype(jnp.float32))

    w1_row = w1.reshape(1, dh).astype(jnp.float32)          # (1, D/2)
    b1_row = b1.reshape(1, dh).astype(jnp.float32)          # (1, D/2)
    # second Linear padded so its output occupies columns [D/2, D) only
    w2_pad = jnp.zeros((dh, D), jnp.float32).at[:, D // 2:].set(
        w2.T.astype(jnp.float32))
    b2_pad = jnp.zeros((1, D), jnp.float32).at[:, D // 2:].set(
        b2.reshape(1, dh).astype(jnp.float32))
    mod = modality_embed.reshape(1, D).astype(jnp.float32)
    return table, w1_row, b1_row, w2_pad, b2_pad, mod


# ----------------------------------------------------------------------------
# Wrapper: pallas_call
# ----------------------------------------------------------------------------
def spatial_temporal_embedding(tokens, spatial_positions, temporal_positions,
                               params, *, res):
    table, w1_row, b1_row, w2_pad, b2_pad, mod = params
    B, N, D = tokens.shape

    kernel = functools.partial(_st_embed_kernel, res=res)
    full = lambda a: pl.BlockSpec(a.shape, lambda b: (0,) * a.ndim)

    return pl.pallas_call(
        kernel,
        out_shape=jax.ShapeDtypeStruct((B, N, D), tokens.dtype),
        grid_spec=pltpu.PrefetchScalarGridSpec(
            num_scalar_prefetch=0,
            grid=(B,),
            in_specs=[
                pl.BlockSpec((1, N, D), lambda b: (b, 0, 0)),   # tokens
                pl.BlockSpec((1, N, 2), lambda b: (b, 0, 0)),   # spatial pos
                pl.BlockSpec((1, N, 1), lambda b: (b, 0, 0)),   # temporal pos
                full(table), full(w1_row), full(b1_row),
                full(w2_pad), full(b2_pad), full(mod),
            ],
            out_specs=pl.BlockSpec((1, N, D), lambda b: (b, 0, 0)),
        ),
        compiler_params=pltpu.CompilerParams(
            dimension_semantics=("parallel",)),
    )(tokens, spatial_positions, temporal_positions,
      table, w1_row, b1_row, w2_pad, b2_pad, mod)


# ----------------------------------------------------------------------------
# Pure-JAX reference mirroring the PyTorch forward (all inputs present)
# ----------------------------------------------------------------------------
def reference_forward(tokens, spatial_positions, temporal_positions,
                      spatial_embed_x, spatial_embed_y, w1, b1, w2, b2,
                      modality_embed):
    B, N, D = tokens.shape
    res = spatial_embed_x.shape[1]
    emb = jnp.zeros_like(tokens)

    x_idx = (spatial_positions[..., 0] * res).astype(jnp.int32)
    y_idx = (spatial_positions[..., 1] * res).astype(jnp.int32)
    x_e = spatial_embed_x[0][x_idx]                 # (B, N, D/4)
    y_e = spatial_embed_y[0][y_idx]
    spatial = jnp.concatenate([x_e, y_e], axis=-1)  # (B, N, D/2)
    emb = emb.at[..., :D // 2].add(spatial)

    h = temporal_positions @ w1.T + b1              # (B, N, D/2)
    h = jax.nn.gelu(h, approximate=False)
    temp = h @ w2.T + b2
    emb = emb.at[..., D // 2:].add(temp)

    emb = emb + modality_embed                      # (1,1,D) broadcast
    return tokens + emb


if __name__ == "__main__":
    # universal_dim=32, max_spatial_resolution=64, batch=2, seq=8
    B, N, D, RES = 2, 8, 32, 64

    key0 = jax.random.PRNGKey(0)
    ks = jax.random.split(key0, 10)

    tokens = jax.random.normal(ks[0], (B, N, D), jnp.float32)
    spatial_positions = jax.random.uniform(ks[1], (B, N, 2), jnp.float32,
                                           0.0, 0.999)
    temporal_positions = jax.random.uniform(ks[2], (B, N, 1), jnp.float32)

    # module parameters (PyTorch layouts)
    spatial_embed_x = jax.random.normal(ks[3], (1, RES, D // 4), jnp.float32) * 0.02
    spatial_embed_y = jax.random.normal(ks[4], (1, RES, D // 4), jnp.float32) * 0.02
    w1 = jax.random.normal(ks[5], (D // 2, 1), jnp.float32) * 0.5     # Linear(1, D/2)
    b1 = jax.random.normal(ks[6], (D // 2,), jnp.float32) * 0.1
    w2 = jax.random.normal(ks[7], (D // 2, D // 2), jnp.float32) * 0.1  # Linear(D/2, D/2)
    b2 = jax.random.normal(ks[8], (D // 2,), jnp.float32) * 0.1
    modality_embed = jax.random.normal(ks[9], (1, 1, D), jnp.float32) * 0.02

    # one-time weight re-layout (hoisted out of the hot path)
    params = prepare_spatial_temporal_params(
        spatial_embed_x, spatial_embed_y, w1, b1, w2, b2, modality_embed)

    out = spatial_temporal_embedding(tokens, spatial_positions,
                                     temporal_positions, params, res=RES)
    out = jax.block_until_ready(out)

    ref = reference_forward(tokens, spatial_positions, temporal_positions,
                            spatial_embed_x, spatial_embed_y,
                            w1, b1, w2, b2, modality_embed)

    assert out.shape == (B, N, D)
    assert jnp.allclose(out, ref, atol=1e-4, rtol=1e-4), "mismatch vs reference"

    # TODO(synk): Optional-None branches (missing spatial/temporal/modality) and
    # ParameterDict name lookup remain host-side control flow, as in PyTorch.
    print("KERNEL_OK")
</pallas_src>

<mosaic_0001>
module attributes {stable_mosaic.version = 11 : i64} {
  func.func @_st_embed_kernel(%arg0: i32, %arg1: memref<1x8x32xf32, #tpu.memory_space<vmem>>, %arg2: memref<1x8x2xf32, #tpu.memory_space<vmem>>, %arg3: memref<1x8x1xf32, #tpu.memory_space<vmem>>, %arg4: memref<128x32xf32, #tpu.memory_space<vmem>>, %arg5: memref<1x16xf32, #tpu.memory_space<vmem>>, %arg6: memref<1x16xf32, #tpu.memory_space<vmem>>, %arg7: memref<16x32xf32, #tpu.memory_space<vmem>>, %arg8: memref<1x32xf32, #tpu.memory_space<vmem>>, %arg9: memref<1x32xf32, #tpu.memory_space<vmem>>, %arg10: memref<1x8x32xf32, #tpu.memory_space<vmem>>) attributes {dimension_semantics = [#tpu.dimension_semantics<parallel>], iteration_bounds = array<i64: 2>, scalar_prefetch = 0 : i64, scratch_operands = 0 : i64, tpu.core_type = #tpu.core_type<tc>, window_params = [{transform_indices = @transform_0, window_bounds = array<i64: 1, 8, 32>}, {transform_indices = @transform_1, window_bounds = array<i64: 1, 8, 2>}, {transform_indices = @transform_2, window_bounds = array<i64: 1, 8, 1>}, {pipeline_mode = #tpu.pipeline_mode<synchronous>, transform_indices = @transform_3, window_bounds = array<i64: 128, 32>}, {pipeline_mode = #tpu.pipeline_mode<synchronous>, transform_indices = @transform_4, window_bounds = array<i64: 1, 16>}, {pipeline_mode = #tpu.pipeline_mode<synchronous>, transform_indices = @transform_5, window_bounds = array<i64: 1, 16>}, {pipeline_mode = #tpu.pipeline_mode<synchronous>, transform_indices = @transform_6, window_bounds = array<i64: 16, 32>}, {pipeline_mode = #tpu.pipeline_mode<synchronous>, transform_indices = @transform_7, window_bounds = array<i64: 1, 32>}, {pipeline_mode = #tpu.pipeline_mode<synchronous>, transform_indices = @transform_8, window_bounds = array<i64: 1, 32>}, {transform_indices = @transform_9, window_bounds = array<i64: 1, 8, 32>}]} {
    %c0 = arith.constant 0 : index
    %c0_0 = arith.constant 0 : index
    %c0_1 = arith.constant 0 : index
    %0 = vector.load %arg1[%c0, %c0_0, %c0_1] : memref<1x8x32xf32, #tpu.memory_space<vmem>>, vector<1x8x32xf32>
    %1 = vector.shape_cast %0 : vector<1x8x32xf32> to vector<8x32xf32>
    %c0_2 = arith.constant 0 : index
    %c0_3 = arith.constant 0 : index
    %c0_4 = arith.constant 0 : index
    %2 = vector.load %arg2[%c0_2, %c0_3, %c0_4] : memref<1x8x2xf32, #tpu.memory_space<vmem>>, vector<1x8x2xf32>
    %3 = vector.shape_cast %2 : vector<1x8x2xf32> to vector<8x2xf32>
    %c0_5 = arith.constant 0 : index
    %c0_6 = arith.constant 0 : index
    %c0_7 = arith.constant 0 : index
    %4 = vector.load %arg3[%c0_5, %c0_6, %c0_7] : memref<1x8x1xf32, #tpu.memory_space<vmem>>, vector<1x8x1xf32>
    %5 = vector.shape_cast %4 : vector<1x8x1xf32> to vector<8x1xf32>
    %6 = vector.extract_strided_slice %3 {offsets = [0, 0], sizes = [8, 1], strides = [1, 1]} : vector<8x2xf32> to vector<8x1xf32>
    %cst = arith.constant 6.400000e+01 : f32
    %7 = vector.broadcast %cst : f32 to vector<8x1xf32>
    %8 = arith.mulf %6, %7 : vector<8x1xf32>
    %9 = arith.fptosi %8 : vector<8x1xf32> to vector<8x1xi32>
    %10 = vector.extract_strided_slice %3 {offsets = [0, 1], sizes = [8, 1], strides = [1, 1]} : vector<8x2xf32> to vector<8x1xf32>
    %cst_8 = arith.constant 6.400000e+01 : f32
    %11 = vector.broadcast %cst_8 : f32 to vector<8x1xf32>
    %12 = arith.mulf %10, %11 : vector<8x1xf32>
    %13 = arith.fptosi %12 : vector<8x1xf32> to vector<8x1xi32>
    %14 = tpu.iota {dimensions = array<i32: 1>} : vector<8x128xi32>
    %15 = vector.broadcast %9 : vector<8x1xi32> to vector<8x128xi32>
    %16 = arith.cmpi eq, %14, %15 : vector<8x128xi32>
    %c64_i32 = arith.constant 64 : i32
    %17 = vector.broadcast %c64_i32 : i32 to vector<8x1xi32>
    %18 = arith.addi %13, %17 : vector<8x1xi32>
    %19 = vector.broadcast %18 : vector<8x1xi32> to vector<8x128xi32>
    %20 = arith.cmpi eq, %14, %19 : vector<8x128xi32>
    %21 = arith.ori %16, %20 : vector<8x128xi1>
    %cst_9 = arith.constant 1.000000e+00 : f32
    %cst_10 = arith.constant 0.000000e+00 : f32
    %22 = vector.broadcast %cst_9 : f32 to vector<8x128xf32>
    %23 = vector.broadcast %cst_10 : f32 to vector<8x128xf32>
    %24 = arith.select %21, %22, %23 : vector<8x128xi1>, vector<8x128xf32>
    %c0_11 = arith.constant 0 : index
    %c0_12 = arith.constant 0 : index
    %25 = vector.load %arg4[%c0_11, %c0_12] : memref<128x32xf32, #tpu.memory_space<vmem>>, vector<128x32xf32>
    %cst_13 = arith.constant dense<0.000000e+00> : vector<8x32xf32>
    %26 = tpu.matmul %24, %25, %cst_13 {dimension_numbers = #tpu.dot_dimension_numbers<[1], [0], [0], [1], [0, 0, 1, 1], [], []>} : vector<8x128xf32>, vector<128x32xf32>, vector<8x32xf32> -> vector<8x32xf32>
    %c0_14 = arith.constant 0 : index
    %c0_15 = arith.constant 0 : index
    %27 = vector.load %arg5[%c0_14, %c0_15] : memref<1x16xf32, #tpu.memory_space<vmem>>, vector<1x16xf32>
    %28 = vector.broadcast %5 : vector<8x1xf32> to vector<8x16xf32>
    %29 = vector.broadcast %27 : vector<1x16xf32> to vector<8x16xf32>
    %30 = arith.mulf %28, %29 : vector<8x16xf32>
    %c0_16 = arith.constant 0 : index
    %c0_17 = arith.constant 0 : index
    %31 = vector.load %arg6[%c0_16, %c0_17] : memref<1x16xf32, #tpu.memory_space<vmem>>, vector<1x16xf32>
    %32 = vector.broadcast %31 : vector<1x16xf32> to vector<8x16xf32>
    %33 = arith.addf %30, %32 : vector<8x16xf32>
    %cst_18 = arith.constant 5.000000e-01 : f32
    %34 = vector.broadcast %cst_18 : f32 to vector<8x16xf32>
    %35 = arith.mulf %34, %33 : vector<8x16xf32>
    %cst_19 = arith.constant 0.707106769 : f32
    %36 = vector.broadcast %cst_19 : f32 to vector<8x16xf32>
    %37 = arith.mulf %33, %36 : vector<8x16xf32>
    %cst_20 = arith.constant 0.000000e+00 : f32
    %38 = vector.broadcast %cst_20 : f32 to vector<8x16xf32>
    %39 = arith.cmpf oge, %37, %38 : vector<8x16xf32>
    %cst_21 = arith.constant 1.000000e+00 : f32
    %cst_22 = arith.constant -1.000000e+00 : f32
    %40 = vector.broadcast %cst_21 : f32 to vector<8x16xf32>
    %41 = vector.broadcast %cst_22 : f32 to vector<8x16xf32>
    %42 = arith.select %39, %40, %41 : vector<8x16xi1>, vector<8x16xf32>
    %43 = arith.mulf %37, %42 : vector<8x16xf32>
    %cst_23 = arith.constant 0.327591091 : f32
    %44 = vector.broadcast %cst_23 : f32 to vector<8x16xf32>
    %45 = arith.mulf %44, %43 : vector<8x16xf32>
    %cst_24 = arith.constant 1.000000e+00 : f32
    %46 = vector.broadcast %cst_24 : f32 to vector<8x16xf32>
    %47 = arith.addf %46, %45 : vector<8x16xf32>
    %cst_25 = arith.constant 1.000000e+00 : f32
    %48 = vector.broadcast %cst_25 : f32 to vector<8x16xf32>
    %49 = arith.divf %48, %47 : vector<8x16xf32>
    %cst_26 = arith.constant 1.06140542 : f32
    %50 = vector.broadcast %cst_26 : f32 to vector<8x16xf32>
    %51 = arith.mulf %50, %49 : vector<8x16xf32>
    %cst_27 = arith.constant -1.45315206 : f32
    %52 = vector.broadcast %cst_27 : f32 to vector<8x16xf32>
    %53 = arith.addf %51, %52 : vector<8x16xf32>
    %54 = arith.mulf %53, %49 : vector<8x16xf32>
    %cst_28 = arith.constant 1.42141378 : f32
    %55 = vector.broadcast %cst_28 : f32 to vector<8x16xf32>
    %56 = arith.addf %54, %55 : vector<8x16xf32>
    %57 = arith.mulf %56, %49 : vector<8x16xf32>
    %cst_29 = arith.constant -0.284496725 : f32
    %58 = vector.broadcast %cst_29 : f32 to vector<8x16xf32>
    %59 = arith.addf %57, %58 : vector<8x16xf32>
    %60 = arith.mulf %59, %49 : vector<8x16xf32>
    %cst_30 = arith.constant 0.254829586 : f32
    %61 = vector.broadcast %cst_30 : f32 to vector<8x16xf32>
    %62 = arith.addf %60, %61 : vector<8x16xf32>
    %63 = arith.mulf %62, %49 : vector<8x16xf32>
    %cst_31 = arith.constant 0.000000e+00 : f32
    %64 = vector.broadcast %cst_31 : f32 to vector<8x16xf32>
    %65 = arith.subf %64, %43 : vector<8x16xf32>
    %66 = arith.mulf %65, %43 : vector<8x16xf32>
    %67 = math.exp %66 : vector<8x16xf32>
    %68 = arith.mulf %63, %67 : vector<8x16xf32>
    %cst_32 = arith.constant 1.000000e+00 : f32
    %69 = vector.broadcast %cst_32 : f32 to vector<8x16xf32>
    %70 = arith.subf %69, %68 : vector<8x16xf32>
    %71 = arith.mulf %42, %70 : vector<8x16xf32>
    %cst_33 = arith.constant 1.000000e+00 : f32
    %72 = vector.broadcast %cst_33 : f32 to vector<8x16xf32>
    %73 = arith.addf %72, %71 : vector<8x16xf32>
    %74 = arith.mulf %35, %73 : vector<8x16xf32>
    %c0_34 = arith.constant 0 : index
    %c0_35 = arith.constant 0 : index
    %75 = vector.load %arg7[%c0_34, %c0_35] : memref<16x32xf32, #tpu.memory_space<vmem>>, vector<16x32xf32>
    %cst_36 = arith.constant dense<0.000000e+00> : vector<8x32xf32>
    %76 = tpu.matmul %74, %75, %cst_36 {dimension_numbers = #tpu.dot_dimension_numbers<[1], [0], [0], [1], [0, 0, 1, 1], [], []>} : vector<8x16xf32>, vector<16x32xf32>, vector<8x32xf32> -> vector<8x32xf32>
    %c0_37 = arith.constant 0 : index
    %c0_38 = arith.constant 0 : index
    %77 = vector.load %arg8[%c0_37, %c0_38] : memref<1x32xf32, #tpu.memory_space<vmem>>, vector<1x32xf32>
    %78 = vector.broadcast %77 : vector<1x32xf32> to vector<8x32xf32>
    %79 = arith.addf %76, %78 : vector<8x32xf32>
    %80 = arith.addf %1, %26 : vector<8x32xf32>
    %81 = arith.addf %80, %79 : vector<8x32xf32>
    %c0_39 = arith.constant 0 : index
    %c0_40 = arith.constant 0 : index
    %82 = vector.load %arg9[%c0_39, %c0_40] : memref<1x32xf32, #tpu.memory_space<vmem>>, vector<1x32xf32>
    %83 = vector.broadcast %82 : vector<1x32xf32> to vector<8x32xf32>
    %84 = arith.addf %81, %83 : vector<8x32xf32>
    %c0_41 = arith.constant 0 : index
    %c0_42 = arith.constant 0 : index
    %c0_43 = arith.constant 0 : index
    %85 = vector.load %arg10[%c0_41, %c0_42, %c0_43] : memref<1x8x32xf32, #tpu.memory_space<vmem>>, vector<1x8x32xf32>
    %86 = vector.shape_cast %85 : vector<1x8x32xf32> to vector<8x32xf32>
    %87 = vector.shape_cast %84 : vector<8x32xf32> to vector<1x8x32xf32>
    tpu.vector_store %arg10[%c0_41, %c0_42, %c0_43], %87 {strides = array<i32>} : memref<1x8x32xf32, #tpu.memory_space<vmem>>, vector<1x8x32xf32>,
    return
  }
  func.func @transform_0(%arg0: i32) -> (i32, i32, i32) {
    %c0_i32 = arith.constant 0 : i32
    %c0_i32_0 = arith.constant 0 : i32
    %c0_i32_1 = arith.constant 0 : i32
    return %arg0, %c0_i32, %c0_i32_0 : i32, i32, i32
  }
  func.func @transform_1(%arg0: i32) -> (i32, i32, i32) {
    %c0_i32 = arith.constant 0 : i32
    %c0_i32_0 = arith.constant 0 : i32
    %c0_i32_1 = arith.constant 0 : i32
    return %arg0, %c0_i32, %c0_i32_0 : i32, i32, i32
  }
  func.func @transform_2(%arg0: i32) -> (i32, i32, i32) {
    %c0_i32 = arith.constant 0 : i32
    %c0_i32_0 = arith.constant 0 : i32
    %c0_i32_1 = arith.constant 0 : i32
    return %arg0, %c0_i32, %c0_i32_0 : i32, i32, i32
  }
  func.func @transform_3(%arg0: i32) -> (i32, i32) {
    %c0_i32 = arith.constant 0 : i32
    %c0_i32_0 = arith.constant 0 : i32
    %c0_i32_1 = arith.constant 0 : i32
    return %c0_i32, %c0_i32_0 : i32, i32
  }
  func.func @transform_4(%arg0: i32) -> (i32, i32) {
    %c0_i32 = arith.constant 0 : i32
    %c0_i32_0 = arith.constant 0 : i32
    %c0_i32_1 = arith.constant 0 : i32
    return %c0_i32, %c0_i32_0 : i32, i32
  }
  func.func @transform_5(%arg0: i32) -> (i32, i32) {
    %c0_i32 = arith.constant 0 : i32
    %c0_i32_0 = arith.constant 0 : i32
    %c0_i32_1 = arith.constant 0 : i32
    return %c0_i32, %c0_i32_0 : i32, i32
  }
  func.func @transform_6(%arg0: i32) -> (i32, i32) {
    %c0_i32 = arith.constant 0 : i32
    %c0_i32_0 = arith.constant 0 : i32
    %c0_i32_1 = arith.constant 0 : i32
    return %c0_i32, %c0_i32_0 : i32, i32
  }
  func.func @transform_7(%arg0: i32) -> (i32, i32) {
    %c0_i32 = arith.constant 0 : i32
    %c0_i32_0 = arith.constant 0 : i32
    %c0_i32_1 = arith.constant 0 : i32
    return %c0_i32, %c0_i32_0 : i32, i32
  }
  func.func @transform_8(%arg0: i32) -> (i32, i32) {
    %c0_i32 = arith.constant 0 : i32
    %c0_i32_0 = arith.constant 0 : i32
    %c0_i32_1 = arith.constant 0 : i32
    return %c0_i32, %c0_i32_0 : i32, i32
  }
  func.func @transform_9(%arg0: i32) -> (i32, i32, i32) {
    %c0_i32 = arith.constant 0 : i32
    %c0_i32_0 = arith.constant 0 : i32
    %c0_i32_1 = arith.constant 0 : i32
    return %arg0, %c0_i32, %c0_i32_0 : i32, i32, i32
  }
}

</mosaic_0001>

<bundles_post_ra>
// kernel: tpu_custom_call.1
= control target key start
LH: loop header
LB: loop body
LE: loop exit
PB: predicated region body
PF: predicated region fallthrough
CT: control target
= control target key end

     0   :  { %s961_s0 = inlined_call_operand.vmem [shape: f32[2,8,32], index: 0, kind: input, shape index: {}]   ;;  %s962_s1 = inlined_call_operand.vmem [shape: f32[2,8,2], index: 1, kind: input, shape index: {}]   ;;  %s963_s2 = inlined_call_operand.vmem [shape: f32[2,8,1], index: 2, kind: input, shape index: {}]   ;;  %s964_s3 = inlined_call_operand.vmem [shape: f32[128,32], index: 3, kind: input, shape index: {}]   ;;  %s965_s4 = inlined_call_operand.vmem [shape: f32[1,16], index: 4, kind: input, shape index: {}]   ;;  %s966_s5 = inlined_call_operand.vmem [shape: f32[1,16], index: 5, kind: input, shape index: {}]   ;;  %s967_s6 = inlined_call_operand.vmem [shape: f32[16,32], index: 6, kind: input, shape index: {}]   ;;  %s968_s7 = inlined_call_operand.vmem [shape: f32[1,32], index: 7, kind: input, shape index: {}]   ;;  %s969_s8 = inlined_call_operand.vmem [shape: f32[1,32], index: 8, kind: input, shape index: {}]   ;;  %s970_s9 = inlined_call_operand.hbm [shape: f32[2,8,32], index: 9, kind: output, shape index: {}]  }
   0x1   :  { %971 = sst [smem:[#allocation5_spill]] %s962_s1 }
   0x2   :  { %972 = sst [smem:[#allocation6_spill]] %s963_s2 }
   0x3   :  { %14 = vsyncpa [#allocation3], 0 }
   0x4   :  { %16 = vsyncpa [#allocation3 + $0x1], 0  ;;  %s799_s30 = smov 0   ;;  %s801_s10 = smov 0  }
   0x5   :  { %s803_s11 = smov 0   ;;  %s805_s12 = smov 0  }
   0x6 LB: > { %s820_s13 = sadd.s32 4294967295, %s743_s12   ;;  %s609_s14 = sadd.s32 4294967294, %s743_s12   ;;  %s743_s12 = sphi %s805_s12, %s980_s12   ;;  %s739_s11 = sphi %s803_s11, %s979_s11   ;;  %s735_s10 = sphi %s801_s10, %s978_s10   ;;  %s731_s30 = sphi %s799_s30, %s977_s30  }
   0x7   : > { %s824_s15 = sadd.s32 1, %s743_s12   ;;  %s233_s16 = sadd.s32 1, %s739_s11 }
   0x8   : > { %s230_s17 = ssub.s32 %s743_s12, %s824_s15  ;;  %p243_p0 = scmp.ne.s32.totalorder %s739_s11, %s735_s10 }
   0x9   : > { %p231_p1 = scmp.eq.s32.totalorder %s230_s17, 0  ;;  %p244_p2 = scmp.eq.s32.totalorder %s820_s13, 1 }
   0xa   : > { %p249_p3 = scmp.ne.s32.totalorder %s735_s10, %s731_s30  ;;  %p250_p4 = scmp.eq.s32.totalorder %s609_s14, 1 }
   0xb   : > { %s835_s18 = scalar_select %p231_p1, %s739_s11, %s233_s16  }
   0xc   : > { %p837_p5 = por %p244_p2, %p243_p0  ;;  %p841_p6 = por %p250_p4, %p249_p3 }
   0xd   : > { %p612_p7 = scmp.ge.s32.totalorder %s743_s12, 1  ;;  %p307_p8 = scmp.lt.s32.totalorder %s743_s12, 3 }
   0xf   : > { %p308_p9 = pnand %p612_p7, %p307_p8 }
  0x10   : > { %p350_p10 = scmp.lt.s32.totalorder (!%p308_p9), %s820_s13, 1  ;;  %s975_s2 = sld [smem:[#allocation6_spill]] (!%p308_p9) }
  0x11   : > { %311 = sbr.rel (%p308_p9) target bundleno = 336 (0x150), region = 56  ;;  %s976_s1 = sld [smem:[#allocation5_spill]] (!%p308_p9) }
  0x12   : > { %s347_s24 = sand.u32 (!%p308_p9), 1, %s735_s10   ;;  %s620_s14 = sshll.u32 (!%p308_p9), %s820_s13, 3 }
  0x13   : > { %s613_s29 = sshll.u32 (!%p308_p9), %s347_s24, 3  ;;  %s521_s23 = scalar_lea.hbm (!%p308_p9), %s970_s9, %s620_s14 }
  0x14   : > { %s511_s26 = scalar_lea.sflag (!%p308_p9), [#allocation3], %s347_s24 }
  0x16   : > { %v395_v0 = vld [vmem:[%s964_s3 + $0x78] sm:$0xff]  ;;  %v745_v1 = vmov 0   ;;  %v746_v2 = vmov 1   ;;  %v394_v3 = vld [vmem:[%s964_s3 + $0x70] sm:$0xff]  ;;  %s351_s25 = scalar_select %p350_p10, %s820_s13, 1  ;;  %v393_v4 = vld [vmem:[%s964_s3 + $0x68] sm:$0xff]  ;;  %v367_v32 = vlaneseq }
  0x17   : > { %671 = vset.pattern.permute.xlu0 %v745_v1  ;;  %672 = vset.pattern.permute.xlu1 %v746_v2  ;;  %v392_v5 = vld [vmem:[%s964_s3 + $0x60] sm:$0xff]  ;;  %v391_v9 = vld [vmem:[%s964_s3 + $0x58] sm:$0xff]  ;;  %v390_v12 = vld [vmem:[%s964_s3 + $0x50] sm:$0xff]  ;;  %v747_v36 = vmov -1.0   ;;  %v748_v42 = vmov 1.0   ;;  %vm477_vm9 = vcmask 130048  }
  0x18   : > { %396 = vmatpush.msra.mxu0 %v395_v0  ;;  %s858_s28 = sshll.u32 %s351_s25, 3  ;;  %v389_v14 = vld [vmem:[%s964_s3 + $0x48] sm:$0xff]  ;;  %v388_v16 = vld [vmem:[%s964_s3 + $0x40] sm:$0xff]  ;;  %v387_v18 = vld [vmem:[%s964_s3 + $0x38] sm:$0xff]  ;;  %v368_v35 = vand.u32 127, %v367_v32  ;;  %s525_s25 = sshll.u32 %s521_s23, 4  ;;  %s526_s25 = int_to_ptr.hbm [resolvable:$true] %s525_s25 }
  0x19   : > { %s361_s16 = scalar_lea.vmem %s975_s2, %s858_s28  ;;  %s357_s22 = scalar_lea.vmem %s976_s1, %s858_s28  ;;  %v386_v19 = vld [vmem:[%s964_s3 + $0x30] sm:$0xff]  ;;  %v385_v20 = vld [vmem:[%s964_s3 + $0x28] sm:$0xff]  ;;  %v384_v21 = vld [vmem:[%s964_s3 + $0x20] sm:$0xff]  ;;  %vm508_vm10 = vcmask 261120  }
  0x1a   : > { %397 = vmatpush.msra.mxu0 %v394_v3  ;;  %v364_v6 = vld [vmem:[%s361_s16] sm:$0xff]  ;;  %v383_v22 = vld [vmem:[%s964_s3 + $0x18] sm:$0xff]  ;;  %v382_v23 = vld [vmem:[%s964_s3 + $0x10] sm:$0xff]  ;;  %s353_s27 = scalar_lea.vmem %s961_s0, %s858_s28  ;;  %s349_s28 = scalar_lea.vmem [#allocation2], %s613_s29 }
  0x1b   : > { %v363_v7 = vld [vmem:[%s357_s22] sm:$0xff]  ;;  %419 = vperm.xlu0 %671, %v364_v6   ;;  %v381_v24 = vld [vmem:[%s964_s3 + $0x8] sm:$0xff]  ;;  %s523_s13 = sshll.u32 %s349_s28, 4  ;;  %s701_s29 = scalar_lea.hbm %s970_s9, 16  ;;  %s524_s13 = int_to_ptr.vmem [resolvable:$true] %s523_s13 }
  0x1c   : > { %398 = vmatpush.msra.mxu0 %v393_v4  ;;  %v365_v8 = vmul.f32 64.0, %v363_v7  ;;  %v380_v25 = vld [vmem:[%s964_s3] sm:$0xff]  ;;  %v472_v26 = vld [vmem:[%s967_s6 + $0x8] sm:$0xff] }
  0x1d   : > { %v471_v27 = vld [vmem:[%s967_s6] sm:$0xff]  ;;  %495 = vmatpush.msra.mxu1 %v472_v26 }
  0x1e   : > { %399 = vmatpush.msra.mxu0 %v392_v5  ;;  %vm623_vm0 = vcmp.lt.s32.totalorder %v365_v8, 0  ;;  %v624_v10 = vceil.f32 %v365_v8  ;;  %v625_v11 = vfloor.f32 %v365_v8  ;;  %v673_v28 = vld [vmem:[%s965_s4] ss:$0 sm:$0xff] }
  0x1f   : > { %496 = vmatpush.msra.mxu1 %v471_v27  ;;  %v674_v29 = vld [vmem:[%s966_s5] ss:$0 sm:$0xff] }
  0x20   : > { %400 = vmatpush.msra.mxu0 %v391_v9  ;;  %v626_v13 = vsel %vm623_vm0, %v624_v10, %v625_v11  ;;  %v675_v9 = vld [vmem:[%s968_s7] ss:$0 sm:$0xff] }
  0x21   : > { %v627_v15 = vcvt.f32.s32 %v626_v13  ;;  %v362_v10 = vld [vmem:[%s353_s27] sm:$0xff]  ;;  %s695_s27 = sshra.s32 %s526_s25, 4  ;;  %s696_s27 = int_to_ptr.hbm [resolvable:$true] %s695_s27 }
  0x22   : > { %401 = vmatpush.msra.mxu0 %v390_v12  ;;  %s697_s14 = scalar_lea.hbm %s696_s27, 8  ;;  %p702_p0 = scmp.lt.s32.totalorder %s696_s27, %s970_s9 }
  0x23   : > { %v373_v17 = vadd.s32 64, %v627_v15  ;;  %370 = vperm.xlu0 %671, %v627_v15   ;;  %v676_v15 = vld [vmem:[%s969_s8] ss:$0 sm:$0xff]  ;;  %p698_p11 = scmp.ne.s32.totalorder %s696_s27, %s697_s14  ;;  %p703_p1 = scmp.lt.s32.totalorder %s701_s29, %s697_s14 }
  0x24   : > { %402 = vmatpush.msra.mxu0 %v389_v14 }
  0x25   : > { %375 = vperm.xlu1 %672, %v373_v17   ;;  %p699_p12 = pnand %p698_p11, %p837_p5  ;;  %p704_p2 = por %p703_p1, %p702_p0 }
  0x26   : > { %403 = vmatpush.msra.mxu0 %v388_v16 }
  0x27   : > { %p700_p13 = pneg %p699_p12 }
  0x28   : > { %404 = vmatpush.msra.mxu0 %v387_v18 }
  0x29   : > { %p705_p3 = pnand %p704_p2, %p700_p13 }
  0x2a   : > { %405 = vmatpush.msra.mxu0 %v386_v19 }
  0x2c   : > { %406 = vmatpush.msra.mxu0 %v385_v20 }
  0x2e   : > { %407 = vmatpush.msra.mxu0 %v384_v21 }
  0x30   : > { %408 = vmatpush.msra.mxu0 %v383_v22 }
  0x32   : > { %409 = vmatpush.msra.mxu0 %v382_v23 }
  0x34   : > { %410 = vmatpush.msra.mxu0 %v381_v24 }
  0x36   : > { %411 = vmatpush.msra.mxu0 %v380_v25 }
  0x8d   : > { %v420_v30 = vpop.permute.xlu0 %419 }
  0x8e   : > { %v425_v31 = vmul.f32 %v673_v28, %v420_v30 }
  0x90   : > { %v430_v33 = vadd.f32 %v674_v29, %v425_v31 }
  0x92   : > { %v432_v34 = vmul.f32 0.70710677, %v430_v33  ;;  %v431_v6 = vmul.f32 0.5, %v430_v33 }
  0x94   : > { %vm433_vm1 = vcmp.ge.f32.partialorder %v432_v34, 0.0 }
  0x95   : > { %v434_v37 = vsel %vm433_vm1, 1.0, %v747_v36  ;;  %v371_v38 = vpop.permute.xlu0 %370 }
  0x96   : > { %v435_v39 = vmul.f32 %v434_v37, %v432_v34  ;;  %vm372_vm2 = vcmp.eq.s32.totalorder %v368_v35, %v371_v38 }
  0x97   : > { %v376_v40 = vpop.permute.xlu1 %375 }
  0x98   : > { %vm377_vm3 = vcmp.eq.s32.totalorder %v368_v35, %v376_v40  ;;  %v436_v41 = vmul.f32 0.3275911, %v435_v39  ;;  %v462_v53 = vsub.f32 0.0, %v435_v39 }
  0x99   : > { %vm378_vm4 = vmor %vm372_vm2, %vm377_vm3 }
  0x9a   : > { %617 = vmatmul.msk.f32.vlgmr.msra.gmra.mxu0 %vm378_vm4, %v748_v42  ;;  %v437_v43 = vadd.f32 1.0, %v436_v41  ;;  %v463_v57 = vmul.f32 %v462_v53, %v435_v39 }
  0x9c   : > { %677 = vrcp.f32 %v437_v43  ;;  %v449_v47 = vand.u32 2147483648, %v437_v43  ;;  %v447_v49 = vand.u32 2147483647, %v437_v43  ;;  %vm443_vm6 = vweird.f32 %v437_v43 }
  0x9d   : > { %v464_v60 = vmul.f32 1.442695, %v463_v57 }
  0x9e   : > { %v450_v51 = vor.u32 1.1754944e-38, %v449_v47  ;;  %vm448_vm8 = vcmp.eq.f32.partialorder %v447_v49, 8.507059e+37 }
  0x9f   : > { %679 = vpow2.f32 %v464_v60 }
  0xa2   : > { %v678_v44 = vpop.eup %677 }
  0xa3   : > { %v439_v45 = vmul.f32 %v678_v44, %v437_v43  ;;  %vm444_vm5 = vweird.f32 %v678_v44 }
  0xa4   : > { %vm445_vm7 = vmor %vm443_vm6, %vm444_vm5 }
  0xa5   : > { %v440_v46 = vsub.f32 1.0, %v439_v45  ;;  %v680_v2 = vpop.eup %679 }
  0xa7   : > { %v441_v48 = vmul.f32 %v678_v44, %v440_v46 }
  0xa9   : > { %v442_v50 = vadd.f32 %v678_v44, %v441_v48 }
  0xab   : > { %v446_v52 = vsel %vm445_vm7, %v678_v44, %v442_v50 }
  0xac   : > { %v451_v54 = vsel %vm448_vm8, %v450_v51, %v446_v52 }
  0xad   : > { %v453_v55 = vmul.f32 1.0614054, %v451_v54 }
  0xaf   : > { %v454_v56 = vadd.f32 -1.4531521, %v453_v55 }
  0xb1   : > { %v455_v58 = vmul.f32 %v454_v56, %v451_v54 }
  0xb3   : > { %v456_v59 = vadd.f32 1.4214138, %v455_v58 }
  0xb5   : > { %v457_v61 = vmul.f32 %v456_v59, %v451_v54 }
  0xb7   : > { %v458_v62 = vadd.f32 -0.28449672, %v457_v61 }
  0xb9   : > { %v459_v63 = vmul.f32 %v458_v62, %v451_v54 }
  0xbb   : > { %v460_v0 = vadd.f32 0.2548296, %v459_v63 }
  0xbd   : > { %v461_v1 = vmul.f32 %v460_v0, %v451_v54 }
  0xbf   : > { %v466_v3 = vmul.f32 %v680_v2, %v461_v1 }
  0xc1   : > { %v467_v4 = vsub.f32 1.0, %v466_v3 }
  0xc3   : > { %v468_v5 = vmul.f32 %v467_v4, %v434_v37 }
  0xc5   : > { %v469_v7 = vadd.f32 1.0, %v468_v5 }
  0xc7   : > { %v470_v8 = vmul.f32 %v469_v7, %v431_v6 }
  0xc9   : > { %618 = vmatmul.msk.f32.vlgmr.msra.gmra.mxu1 %vm477_vm9, %v470_v8 }
 0x117   : > { %v413_v11 = vpop.f32.mrf.mxu0 }
 0x118   : > { %v501_v13 = vadd.f32 %v413_v11, %v362_v10 }
 0x146   : > { %v498_v12 = vpop.f32.mrf.mxu1 }
 0x147   : > { %v499_v14 = vadd.f32 %v675_v9, %v498_v12 }
 0x149   : > { %v502_v16 = vadd.f32 %v501_v13, %v499_v14 }
 0x14b   : > { %v507_v17 = vadd.f32 %v676_v15, %v502_v16 }
 0x14d   : > { %509 = vst.msk [vmem:[%s349_s28] sm:$0xff] %vm508_vm10, %v507_v17 }
 0x14e   : > { %708 = shalt.err (!%p705_p3)
}
 0x14f   : > { %628 = dma.vmem_to_hbm [thread:$0]  (%p837_p5), %s524_s13, 128, %s526_s25, %s511_s26  }
 0x150 PF: > { %p634_p4 = scmp.ge.s32.totalorder %s743_s12, 2  ;;  %s537_s24 = sand.u32 1, %s731_s30  }
 0x151   : > { %s538_s21 = scalar_lea.sflag [#allocation3], %s537_s24 }
 0x152   : > { %p631_p7 = pnand %p634_p4, %p841_p6 }
 0x154   : > { %p632_p8 = pneg %p631_p7 }
 0x156   : > { %726 = dma.done.wait (%p632_p8), %s538_s21, 128  }
 0x157   : > { %728 = vsyncadd (%p632_p8), %s538_s21, 4294967168  ;;  %p19_p9 = scmp.ge.s32.totalorder %s824_s15, 4   ;;  %s977_s30 = smov %s735_s10 }
 0x158   : > { %s978_s10 = smov %s739_s11  ;;  %s979_s11 = smov %s835_s18 }
 0x159   : > { %s980_s12 = smov %s824_s15  ;;  %21 = sbr.rel (!%p19_p9) target bundleno = 6 (0x6), region = 97 }
 0x15e   :  { %544 = vsyncpa [#allocation3], 1 }
 0x15f   :  { %546 = vsyncpa [#allocation3 + $0x1], 1 }

</bundles_post_ra>
